<compile_context>
chip_gen: v7x
topology: tpu7x:2x2x1
jax: 0.10.0
libtpu: 0.0.40
codegen_flags: <defaults>
</compile_context>

<pallas_src>
import functools

import jax
import jax.numpy as jnp
from jax import lax
from jax.experimental import pallas as pl
from jax.experimental.pallas import tpu as pltpu

_MIB = 1 << 20
# Conservative live-buffer budget that fits every generation once the scoped
# VMEM limit is raised (v5e default 16 MiB scope, v7x 64 MiB physical).
_VMEM_BUDGET = 24 * _MIB
# Below this flop count the Pallas launch / pad-slice glue dominates.
_MIN_PALLAS_FLOPS = 1 << 20


def _round_up(x: int, m: int) -> int:
    return (x + m - 1) // m * m


def _sublane(dtype) -> int:
    # sub-32-bit dtypes pack along sublanes: 8 rows/vreg f32, 16 bf16, 32 int8.
    return {4: 8, 2: 16, 1: 32}.get(jnp.dtype(dtype).itemsize, 8)


def _pick_tm(batch: int, sub: int) -> int:
    """Row tile: MXU-friendly, sublane-aligned, without exploding batch padding."""
    if batch <= 256:
        return _round_up(batch, sub)
    best_tm, best_pad = None, None
    for tm in (512, 256, 128, 64):
        pad = _round_up(batch, tm) - batch
        if 3 * pad <= batch:          # largest tile wasting <= 1/3 of the rows
            return tm
        if best_pad is None or pad < best_pad:
            best_tm, best_pad = tm, pad
    return best_tm


def _equal_linear_kernel(x_ref, w_ref, b_ref, o_ref, acc_ref, *, lr_mul):
    # x_ref : (tm, tk)  input row tile
    # w_ref : (tn, tk)  weight rows, PyTorch [out, in] layout
    # b_ref : (1, tn)   bias slice
    # o_ref : (tm, tn)  output tile (resident across the k axis)
    # acc_ref: (tm, tn) f32 accumulator scratch
    k = pl.program_id(2)

    @pl.when(k == 0)
    def _init():
        acc_ref[...] = jnp.zeros_like(acc_ref)

    # Contract in_dim with in_dim (x @ w.T) — no wrapper-side transpose.
    # TODO(synk): verify via pl.lower_as_mlir that no per-tile vxpose is emitted;
    # if it were, store the weight pre-transposed [in, out] once at init.
    acc_ref[...] += lax.dot_general(
        x_ref[...], w_ref[...],
        dimension_numbers=(((1,), (1,)), ((), ())),
        preferred_element_type=jnp.float32,
    )

    @pl.when(k == pl.num_programs(2) - 1)
    def _finalize():
        # (x @ (w*lr).T + b*lr) == (x @ w.T + b) * lr  ->  one fused VPU multiply.
        out = (acc_ref[...] + b_ref[...].astype(jnp.float32)) * lr_mul
        o_ref[...] = out.astype(o_ref.dtype)


def equal_linear(x, weight, bias=None, lr_mul=1.0, *, force_pallas=False,
                 vmem_budget=_VMEM_BUDGET):
    """EqualLinear forward.  x: [..., in_dim], weight: [out_dim, in_dim]."""
    *lead, in_dim = x.shape
    out_dim, w_in = weight.shape
    assert w_in == in_dim, "weight must be [out_dim, in_dim]"
    if bias is None:
        bias = jnp.zeros((out_dim,), dtype=x.dtype)

    x2 = x.reshape(-1, in_dim)
    B = x2.shape[0]

    # Fast path: tiny problems are strictly faster as a fused XLA dot.
    if not force_pallas and 2 * B * in_dim * out_dim < _MIN_PALLAS_FLOPS:
        out = x2 @ (weight * lr_mul).T + bias * lr_mul
        return out.astype(x.dtype).reshape(*lead, out_dim)

    x_isz = jnp.dtype(x.dtype).itemsize
    w_isz = jnp.dtype(weight.dtype).itemsize

    sub = _sublane(x.dtype)
    tm = _pick_tm(B, sub)
    b_pad = _round_up(B, tm)
    num_i = b_pad // tm

    out_pad = _round_up(out_dim, 128)

    # ---- config 1: full-K (no reduction axis) -------------------------------
    # num_i > 1 : keep the whole weight as ONE block with a constant index map
    #             -> Pallas skips the repeat DMA, weight read from HBM once.
    # num_i == 1: split out dim into 256-wide tiles (lane dense, 256x256-MXU
    #             friendly, parallel axis for v7x's second TensorCore).
    if num_i > 1 or out_pad < 512 or out_pad % 256 != 0:
        tn_a, num_j_a = out_pad, 1
    else:
        tn_a, num_j_a = 256, out_pad // 256

    est_a = (2 * tm * in_dim * x_isz          # x tile (double buffered)
             + 2 * tn_a * in_dim * w_isz      # weight block(s)
             + 2 * tm * tn_a * x_isz          # output tile
             + tm * tn_a * 4                  # f32 accumulator scratch
             + 2 * out_pad * 4)               # bias

    if est_a <= vmem_budget:
        tk, k_pad = in_dim, in_dim
        tn, num_j, num_k = tn_a, num_j_a, 1
        est = est_a
    else:
        # ---- config 2: K-tiled reduction (bounded VMEM for large in_dim) ----
        tk = min(512, _round_up(in_dim, 128))
        k_pad = _round_up(in_dim, tk)
        num_k = k_pad // tk
        out_pad = _round_up(out_dim, 256)     # 256-wide N tiles for v6e/v7x MXU
        tn = 256
        num_j = out_pad // tn
        est = (2 * tm * tk * x_isz + 2 * tn * tk * w_isz
               + 2 * tm * tn * x_isz + tm * tn * 4 + 2 * out_pad * 4)

    # ---- padding glue --------------------------------------------------------
    # NOTE: in production pre-pad weight/bias once at init; these pads are
    # no-ops for aligned layer sizes (e.g. StyleGAN's 512x512 mapping MLP).
    if (b_pad, k_pad) != (B, in_dim):
        x2 = jnp.pad(x2, ((0, b_pad - B), (0, k_pad - in_dim)))
    if (out_pad, k_pad) != (out_dim, in_dim):
        weight = jnp.pad(weight, ((0, out_pad - out_dim), (0, k_pad - in_dim)))
    if out_pad != out_dim:
        bias = jnp.pad(bias, (0, out_pad - out_dim))
    b2 = bias.reshape(1, out_pad)

    grid = (num_i, num_j, num_k)
    kernel = functools.partial(_equal_linear_kernel, lr_mul=float(lr_mul))

    # Streaming-accurate cost estimate (advisory).
    w_reads = 1 if (num_j == 1 and num_k == 1) else num_i
    x_reads = 1 if num_j == 1 else num_j
    cost = pl.CostEstimate(
        flops=2 * b_pad * k_pad * out_pad,
        transcendentals=0,
        bytes_accessed=(x_reads * b_pad * k_pad * x_isz
                        + w_reads * out_pad * k_pad * w_isz
                        + b_pad * out_pad * x_isz
                        + out_pad * 4),
    )

    vmem_limit = int(min(48 * _MIB, max(32 * _MIB, 2 * est)))

    out = pl.pallas_call(
        kernel,
        out_shape=jax.ShapeDtypeStruct((b_pad, out_pad), x.dtype),
        grid=grid,
        in_specs=[
            pl.BlockSpec((tm, tk), lambda i, j, k: (i, k)),   # x row tile
            pl.BlockSpec((tn, tk), lambda i, j, k: (j, k)),   # weight tile [out, in]
            pl.BlockSpec((1, tn), lambda i, j, k: (0, j)),    # bias slice
        ],
        out_specs=pl.BlockSpec((tm, tn), lambda i, j, k: (i, j)),
        scratch_shapes=[pltpu.VMEM((tm, tn), jnp.float32)],
        compiler_params=pltpu.CompilerParams(
            dimension_semantics=("parallel", "parallel", "arbitrary"),
            vmem_limit_bytes=vmem_limit,
        ),
        cost_estimate=cost,
    )(x2, weight, b2)

    return out[:B, :out_dim].reshape(*lead, out_dim)


def _reference(x, weight, bias, lr_mul):
    return x @ (weight * lr_mul).T + bias * lr_mul


if __name__ == "__main__":
    key = jax.random.PRNGKey(0)

    cases = [
        # (B, in_dim, out_dim, lr_mul, kwargs)
        (8, 32, 32, 0.5, dict(force_pallas=True)),          # tiny: force Pallas path
        (64, 384, 512, 0.01, dict()),                        # single i-tile, j split (tn=256)
        (300, 256, 320, 1.0, dict()),                        # ragged batch, resident weight
        (40, 640, 200, 1.0, dict(vmem_budget=1)),            # force K-tiled reduction path
    ]

    ok = True
    for B, in_dim, out_dim, lr_mul, kw in cases:
        key, k_x, k_w = jax.random.split(key, 3)
        # EqualLinear.__init__: weight ~ randn(out, in), bias = zeros(out).
        weight = jax.random.normal(k_w, (out_dim, in_dim), dtype=jnp.float32)
        bias = jnp.zeros((out_dim,), dtype=jnp.float32)
        x = jax.random.normal(k_x, (B, in_dim), dtype=jnp.float32)

        out = equal_linear(x, weight, bias, lr_mul=lr_mul, **kw)
        out = jax.block_until_ready(out)
        ref = _reference(x, weight, bias, lr_mul)

        if out.shape != (B, out_dim):
            ok = False
            print(f"shape mismatch for {(B, in_dim, out_dim)}: {out.shape}")
        elif not jnp.allclose(out, ref, atol=2e-2, rtol=2e-2):
            ok = False
            err = float(jnp.max(jnp.abs(out - ref)))
            print(f"value mismatch for {(B, in_dim, out_dim)}: max abs err {err}")

    assert ok, "EqualLinear Pallas kernel mismatch vs reference"
    print("KERNEL_OK")
</pallas_src>

<mosaic_0001>
module attributes {stable_mosaic.version = 11 : i64} {
  func.func @_equal_linear_kernel(%arg0: i32, %arg1: i32, %arg2: i32, %arg3: memref<8x32xf32, #tpu.memory_space<vmem>>, %arg4: memref<128x32xf32, #tpu.memory_space<vmem>>, %arg5: memref<1x128xf32, #tpu.memory_space<vmem>>, %arg6: memref<8x128xf32, #tpu.memory_space<vmem>>, %arg7: memref<8x128xf32, #tpu.memory_space<vmem>>) attributes {dimension_semantics = [#tpu.dimension_semantics<parallel>, #tpu.dimension_semantics<parallel>, #tpu.dimension_semantics<arbitrary>], iteration_bounds = array<i64: 1, 1, 1>, scalar_prefetch = 0 : i64, scratch_operands = 1 : i64, tpu.core_type = #tpu.core_type<tc>, window_params = [{transform_indices = @transform_0, window_bounds = array<i64: 8, 32>}, {transform_indices = @transform_1, window_bounds = array<i64: 128, 32>}, {transform_indices = @transform_2, window_bounds = array<i64: 1, 128>}, {transform_indices = @transform_3, window_bounds = array<i64: 8, 128>}]} {
    %c0_i32 = arith.constant 0 : i32
    %0 = arith.cmpi eq, %arg2, %c0_i32 : i32
    %1 = arith.extui %0 : i1 to i32
    %c0_i32_0 = arith.constant 0 : i32
    %2 = arith.cmpi ne, %1, %c0_i32_0 : i32
    scf.if %2 {
      %cst_10 = arith.constant 0.000000e+00 : f32
      %12 = vector.broadcast %cst_10 : f32 to vector<8x128xf32>
      %c0_11 = arith.constant 0 : index
      %c0_12 = arith.constant 0 : index
      %13 = vector.load %arg7[%c0_11, %c0_12] : memref<8x128xf32, #tpu.memory_space<vmem>>, vector<8x128xf32>
      tpu.vector_store %arg7[%c0_11, %c0_12], %12 {strides = array<i32>} : memref<8x128xf32, #tpu.memory_space<vmem>>, vector<8x128xf32>,
    } else {
    }
    %c0 = arith.constant 0 : index
    %c0_1 = arith.constant 0 : index
    %3 = vector.load %arg7[%c0, %c0_1] : memref<8x128xf32, #tpu.memory_space<vmem>>, vector<8x128xf32>
    %c0_2 = arith.constant 0 : index
    %c0_3 = arith.constant 0 : index
    %4 = vector.load %arg3[%c0_2, %c0_3] : memref<8x32xf32, #tpu.memory_space<vmem>>, vector<8x32xf32>
    %c0_4 = arith.constant 0 : index
    %c0_5 = arith.constant 0 : index
    %5 = vector.load %arg4[%c0_4, %c0_5] : memref<128x32xf32, #tpu.memory_space<vmem>>, vector<128x32xf32>
    %cst = arith.constant dense<0.000000e+00> : vector<8x128xf32>
    %6 = tpu.matmul %4, %5, %cst {dimension_numbers = #tpu.dot_dimension_numbers<[1], [1], [0], [0], [0, 0, 1, 0], [], []>} : vector<8x32xf32>, vector<128x32xf32>, vector<8x128xf32> -> vector<8x128xf32>
    %7 = arith.addf %3, %6 : vector<8x128xf32>
    %c0_6 = arith.constant 0 : index
    %c0_7 = arith.constant 0 : index
    %8 = vector.load %arg7[%c0_6, %c0_7] : memref<8x128xf32, #tpu.memory_space<vmem>>, vector<8x128xf32>
    tpu.vector_store %arg7[%c0_6, %c0_7], %7 {strides = array<i32>} : memref<8x128xf32, #tpu.memory_space<vmem>>, vector<8x128xf32>,
    %c0_i32_8 = arith.constant 0 : i32
    %9 = arith.cmpi eq, %arg2, %c0_i32_8 : i32
    %10 = arith.extui %9 : i1 to i32
    %c0_i32_9 = arith.constant 0 : i32
    %11 = arith.cmpi ne, %10, %c0_i32_9 : i32
    scf.if %11 {
      %c0_10 = arith.constant 0 : index
      %c0_11 = arith.constant 0 : index
      %12 = vector.load %arg7[%c0_10, %c0_11] : memref<8x128xf32, #tpu.memory_space<vmem>>, vector<8x128xf32>
      %c0_12 = arith.constant 0 : index
      %c0_13 = arith.constant 0 : index
      %13 = vector.load %arg5[%c0_12, %c0_13] : memref<1x128xf32, #tpu.memory_space<vmem>>, vector<1x128xf32>
      %14 = vector.broadcast %13 : vector<1x128xf32> to vector<8x128xf32>
      %15 = arith.addf %12, %14 : vector<8x128xf32>
      %cst_14 = arith.constant 5.000000e-01 : f32
      %16 = vector.broadcast %cst_14 : f32 to vector<8x128xf32>
      %17 = arith.mulf %15, %16 : vector<8x128xf32>
      %c0_15 = arith.constant 0 : index
      %c0_16 = arith.constant 0 : index
      %18 = vector.load %arg6[%c0_15, %c0_16] : memref<8x128xf32, #tpu.memory_space<vmem>>, vector<8x128xf32>
      tpu.vector_store %arg6[%c0_15, %c0_16], %17 {strides = array<i32>} : memref<8x128xf32, #tpu.memory_space<vmem>>, vector<8x128xf32>,
    } else {
    }
    return
  }
  func.func @transform_0(%arg0: i32, %arg1: i32, %arg2: i32) -> (i32, i32) {
    %c0_i32 = arith.constant 0 : i32
    return %arg0, %arg2 : i32, i32
  }
  func.func @transform_1(%arg0: i32, %arg1: i32, %arg2: i32) -> (i32, i32) {
    %c0_i32 = arith.constant 0 : i32
    return %arg1, %arg2 : i32, i32
  }
  func.func @transform_2(%arg0: i32, %arg1: i32, %arg2: i32) -> (i32, i32) {
    %c0_i32 = arith.constant 0 : i32
    %c0_i32_0 = arith.constant 0 : i32
    return %c0_i32, %arg1 : i32, i32
  }
  func.func @transform_3(%arg0: i32, %arg1: i32, %arg2: i32) -> (i32, i32) {
    %c0_i32 = arith.constant 0 : i32
    return %arg0, %arg1 : i32, i32
  }
}

</mosaic_0001>

<bundles_post_ra>
// kernel: tpu_custom_call.1
= control target key start
LH: loop header
LB: loop body
LE: loop exit
PB: predicated region body
PF: predicated region fallthrough
CT: control target
= control target key end

     0   :  { %vm38_vm0 = vcmask 261120   ;;  %v320_v2 = vmov 0.0|0.0   ;;  %vm321_vm2 = vmmov 0   ;;  %v322_v5 = vmov 0.0   ;;  %s433_s0 = inlined_call_operand.vmem [shape: f32[8,32], index: 0, kind: input, shape index: {}]   ;;  %s434_s1 = inlined_call_operand.vmem [shape: f32[128,32], index: 1, kind: input, shape index: {}]   ;;  %s435_s2 = inlined_call_operand.vmem [shape: f32[1,128], index: 2, kind: input, shape index: {}]   ;;  %s436_s3 = inlined_call_operand.hbm [shape: f32[8,128], index: 3, kind: output, shape index: {}]  }
   0x1   :  { %v22_v0 = vld [vmem:[%s434_s1] sm:$0xff]  ;;  %v23_v1 = vld [vmem:[%s434_s1 + $0x8] sm:$0xff]  ;;  %260 = vmatprep.subr.bf16.mxu0 %v320_v2  ;;  %vm352_vm1 = vmpackc.low %vm38_vm0, %vm38_vm0  ;;  %257 = vmatprep.mubr.msk.f32.mxu0 %vm321_vm2, %v322_v5 }
   0x2   :  { %v261_v3 = vpack.c.bf16 %v23_v1, %v22_v0  ;;  %v24_v6 = vld [vmem:[%s434_s1 + $0x10] sm:$0xff]  ;;  %v25_v7 = vld [vmem:[%s434_s1 + $0x18] sm:$0xff] }
   0x4   :  { %263 = vmatpush3.bf16.xpose.msk.msra.mxu0 %vm352_vm1, %v261_v3 }
   0x5   :  { %264 = vmatprep.subr.bf16.mxu0 %v320_v2 }
   0x6   :  { %8 = vsyncpa [#allocation4], 0  ;;  %v265_v8 = vpack.c.bf16 %v25_v7, %v24_v6  ;;  %v26_v9 = vld [vmem:[%s434_s1 + $0x20] sm:$0xff]  ;;  %v27_v10 = vld [vmem:[%s434_s1 + $0x28] sm:$0xff]  ;;  %s323_s21 = smov [#allocation3]  }
   0x7   :  { %v269_v11 = vpack.c.bf16 %v27_v10, %v26_v9  ;;  %v28_v12 = vld [vmem:[%s434_s1 + $0x30] sm:$0xff]  ;;  %v29_v13 = vld [vmem:[%s434_s1 + $0x38] sm:$0xff]  ;;  %v30_v15 = vld [vmem:[%s434_s1 + $0x40] sm:$0xff]  ;;  %s182_s22 = sshll.u32 %s323_s21, 4  ;;  %s183_s22 = int_to_ptr.vmem [resolvable:$true] %s182_s22 }
   0x8   :  { %v273_v14 = vpack.c.bf16 %v29_v13, %v28_v12  ;;  %v31_v16 = vld [vmem:[%s434_s1 + $0x48] sm:$0xff]  ;;  %v32_v18 = vld [vmem:[%s434_s1 + $0x50] sm:$0xff]  ;;  %v33_v19 = vld [vmem:[%s434_s1 + $0x58] sm:$0xff]  ;;  %p301_p1 = scmp.lt.s32.totalorder %s183_s22, %s183_s22 }
   0x9   :  { %v277_v17 = vpack.c.bf16 %v31_v16, %v30_v15  ;;  %v281_v20 = vpack.c.bf16 %v33_v19, %v32_v18  ;;  %v34_v21 = vld [vmem:[%s434_s1 + $0x60] sm:$0xff]  ;;  %v35_v22 = vld [vmem:[%s434_s1 + $0x68] sm:$0xff]  ;;  %v36_v24 = vld [vmem:[%s434_s1 + $0x70] sm:$0xff] }
   0xa   :  { %v285_v23 = vpack.c.bf16 %v35_v22, %v34_v21  ;;  %v37_v25 = vld [vmem:[%s434_s1 + $0x78] sm:$0xff]  ;;  %v21_v27 = vld [vmem:[%s433_s0] sm:$0xff]  ;;  %s296_s1 = scalar_lea.vmem %s183_s22, 128 }
   0xb   :  { %v289_v26 = vpack.c.bf16 %v37_v25, %v36_v24  ;;  %v207_v28 = vld [vmem:[%s435_s2] ss:$0 sm:$0xff]  ;;  %p297_p0 = scmp.ne.s32.totalorder %s183_s22, %s296_s1  ;;  %p302_p2 = scmp.lt.s32.totalorder %s296_s1, %s296_s1 }
   0xc   :  { %267 = vmatpush3.bf16.xpose.msk.msra.mxu0 %vm352_vm1, %v265_v8 }
   0xd   :  { %268 = vmatprep.subr.bf16.mxu0 %v320_v2  ;;  %p303_p3 = por %p302_p2, %p301_p1 }
   0xf   :  { %p304_p4 = pnand %p303_p3, %p297_p0 }
  0x14   :  { %271 = vmatpush3.bf16.xpose.msk.msra.mxu0 %vm352_vm1, %v269_v11 }
  0x15   :  { %272 = vmatprep.subr.bf16.mxu0 %v320_v2 }
  0x1c   :  { %275 = vmatpush3.bf16.xpose.msk.msra.mxu0 %vm352_vm1, %v273_v14 }
  0x1d   :  { %276 = vmatprep.subr.bf16.mxu0 %v320_v2 }
  0x24   :  { %279 = vmatpush3.bf16.xpose.msk.msra.mxu0 %vm352_vm1, %v277_v17 }
  0x25   :  { %280 = vmatprep.subr.bf16.mxu0 %v320_v2 }
  0x2c   :  { %283 = vmatpush3.bf16.xpose.msk.msra.mxu0 %vm352_vm1, %v281_v20 }
  0x2d   :  { %284 = vmatprep.subr.bf16.mxu0 %v320_v2 }
  0x34   :  { %287 = vmatpush3.bf16.xpose.msk.msra.mxu0 %vm352_vm1, %v285_v23 }
  0x35   :  { %288 = vmatprep.subr.bf16.mxu0 %v320_v2 }
  0x3c   :  { %291 = vmatpush3.bf16.xpose.msk.msra.mxu0 %vm352_vm1, %v289_v26 }
  0x43   :  { %258 = vmatmul.mubr.msk.f32.vlgmr.msra.gmra.mrb[0].mxu0 %vm38_vm0, %v21_v27 }
 0x116   :  { %v156_v29 = vpop.f32.mrb[0].mxu0 }
 0x117   :  { %v173_v30 = vadd.f32 %v207_v28, %v156_v29  ;;  %v259_v31 = vpop.f32.mrb[1].mxu0 }
 0x119   :  { %v174_v32 = vmul.f32 0.5, %v173_v30 }
 0x11b   :  { %175 = vst [vmem:[#allocation3] sm:$0xff] %v174_v32 }
 0x11c   :  { %307 = shalt.err (!%p304_p4)
}
 0x11d   :  { %s308_s24 = scalar_lea.hbm %s436_s3, 128 }
 0x11e   :  { %p309_p5 = scmp.ne.s32.totalorder %s436_s3, %s308_s24  ;;  %p312_p6 = scmp.lt.u32.totalorder %s308_s24, %s436_s3 }
 0x120   :  { %p314_p7 = pnand %p312_p6, %p309_p5 }
 0x122   :  { %317 = shalt.err (!%p314_p7)
}
 0x123   :  { %185 = dma.vmem_to_hbm [thread:$0]  %s183_s22, 128, %s436_s3, [#allocation4]  }
 0x124   :  { %318 = dma.done.wait [#allocation4], 128  }
 0x125   :  { %319 = vsyncadd [#allocation4], 4294967168 }
 0x126   :  { %189 = vsyncpa [#allocation4], 1 }

</bundles_post_ra>
